<compile_context>
chip_gen: v5e
topology: v5e:2x2
jax: 0.10.0
libtpu: 0.0.40
codegen_flags: <defaults>
</compile_context>

<pallas_src>
import functools

import jax
import jax.numpy as jnp
from jax.experimental import pallas as pl
from jax.experimental.pallas import tpu as pltpu


_MASK_VALUE = -1e30  # large finite negative (NaN-safe); causal rows always have >=1 valid key


# --------------------------- fused all-heads QKV projection ---------------------------

def _qkv_proj_kernel(x_ref, w_ref, q_ref, kv_ref):
    C = q_ref.shape[-1]
    # One wide (ts, C) @ (C, 3C) matmul per tile; f32 accumulation, cast once on store.
    qkv = jnp.dot(x_ref[0], w_ref[...], preferred_element_type=jnp.float32)
    q_ref[0] = qkv[:, :C].astype(q_ref.dtype)
    kv_ref[0] = qkv[:, C:].astype(kv_ref.dtype)


def _project_qkv(x, w_qkv_t, *, ts, compute_dtype, vmem_limit_bytes):
    B, T, C = x.shape
    return pl.pallas_call(
        _qkv_proj_kernel,
        out_shape=(jax.ShapeDtypeStruct((B, T, C), compute_dtype),
                   jax.ShapeDtypeStruct((B, T, 2 * C), compute_dtype)),
        grid=(B, T // ts),
        in_specs=[
            pl.BlockSpec((1, ts, C), lambda b, i: (b, i, 0)),     # x tile
            pl.BlockSpec((C, 3 * C), lambda b, i: (0, 0)),        # [Wq^T | Wk^T | Wv^T]
        ],
        out_specs=(pl.BlockSpec((1, ts, C), lambda b, i: (b, i, 0)),
                   pl.BlockSpec((1, ts, 2 * C), lambda b, i: (b, i, 0))),
        compiler_params=pltpu.CompilerParams(
            dimension_semantics=("parallel", "parallel"),
            vmem_limit_bytes=vmem_limit_bytes),
    )(x, w_qkv_t)


# --------------------------------- flash attention ------------------------------------

def _mha_flash_kernel(q_ref, kv_ref, wproj_ref, bproj_ref, out_ref,
                      m_sc, l_sc, acc_sc,
                      *, num_heads, head_size, scale, compute_dtype):
    qi = pl.program_id(1)
    ki = pl.program_id(2)
    nk = pl.num_programs(2)
    tq, C = acc_sc.shape
    tk = kv_ref.shape[1]
    exact = compute_dtype == jnp.float32

    @pl.when(ki == 0)
    def _init():
        m_sc[...] = jnp.full_like(m_sc, _MASK_VALUE)
        l_sc[...] = jnp.zeros_like(l_sc)
        acc_sc[...] = jnp.zeros_like(acc_sc)

    def _step(masked):
        q_all = q_ref[0]                # (tq, C)  heads stacked in columns (precomputed)
        kv = kv_ref[0]                  # (tk, 2C) precomputed [K | V]
        k_all = kv[:, :C]
        v_all = kv[:, C:]

        if masked:
            # Per-tile causal mask from global positions (only on diagonal tiles).
            q_pos = qi * tq + jax.lax.broadcasted_iota(jnp.int32, (tq, tk), 0)
            k_pos = ki * tk + jax.lax.broadcasted_iota(jnp.int32, (tq, tk), 1)
            causal = k_pos <= q_pos

        for h in range(num_heads):      # static unroll, H is small
            lo, hi = h * head_size, (h + 1) * head_size

            # Scores: contract the head dim directly (no in-kernel transpose).
            s = jax.lax.dot_general(q_all[:, lo:hi], k_all[:, lo:hi],
                                    (((1,), (1,)), ((), ())),
                                    preferred_element_type=jnp.float32) * scale
            if masked:
                s = jnp.where(causal, s, _MASK_VALUE)

            # Online softmax update (f32 state, heads on lanes of (tq, H) scratch).
            m_prev = m_sc[:, h:h + 1]                                   # (tq, 1)
            m_new = jnp.maximum(m_prev, s.max(axis=-1, keepdims=True))
            alpha = jnp.exp(m_prev - m_new)
            p = jnp.exp(s - m_new)

            l_sc[:, h:h + 1] = alpha * l_sc[:, h:h + 1] + p.sum(axis=-1, keepdims=True)
            acc_sc[:, lo:hi] = alpha * acc_sc[:, lo:hi] + jnp.dot(
                p.astype(compute_dtype), v_all[:, lo:hi],
                preferred_element_type=jnp.float32)
            m_sc[:, h:h + 1] = m_new

    on_band = ki * tk <= qi * tq + (tq - 1)          # tile intersects the causal region
    full_tile = (ki + 1) * tk - 1 <= qi * tq         # tile is fully below the diagonal

    @pl.when(jnp.logical_and(on_band, full_tile))
    def _interior():                                  # unmasked fast path
        _step(masked=False)

    @pl.when(jnp.logical_and(on_band, jnp.logical_not(full_tile)))
    def _diagonal():                                  # masked (diagonal) path
        _step(masked=True)

    @pl.when(ki == nk - 1)
    def _finalize():
        inv_l = pl.reciprocal(l_sc[...], approx=not exact)              # (tq, H)
        for h in range(num_heads):
            lo, hi = h * head_size, (h + 1) * head_size
            acc_sc[:, lo:hi] = acc_sc[:, lo:hi] * inv_l[:, h:h + 1]
        att = acc_sc[...].astype(compute_dtype)                          # (tq, C), lane-dense
        out = jnp.dot(att, wproj_ref[...],
                      preferred_element_type=jnp.float32) + bproj_ref[...]
        # TODO(synk): dropout p == 0 in the reference config -> identity, omitted.
        out_ref[0] = out.astype(out_ref.dtype)


# ------------------------------------- wrapper -----------------------------------------

def multi_head_attention(x, wq, wk, wv, wproj, bproj, *,
                         tq=None, tk=None,
                         compute_dtype=jnp.bfloat16,
                         vmem_limit_bytes=48 * 1024 * 1024):
    """x: (B,T,C); wq/wk/wv: (H, hs, C) (PyTorch Linear layout); wproj: (C,C); bproj: (1,C)."""
    B, T, C = x.shape
    H, hs, C_in = wq.shape
    assert C_in == C and H * hs == C, "num_heads * head_size must equal n_embd"

    if tq is None:
        tq = min(T, 256)
    if tk is None:
        tk = min(T, 256)
    assert T % tq == 0 and T % tk == 0, "T must be divisible by the tile sizes"
    sub = 16 if compute_dtype == jnp.bfloat16 else 8      # bf16 minimum tile is (16, 128)
    assert (tq % sub == 0 or tq == T) and (tk % sub == 0 or tk == T), \
        "tiles must respect the dtype's minimum sublane tiling"

    # ----- one-time weight preparation (outside the kernels, no in-kernel transposes) -----
    # Stacked-and-transposed per-head weights: W_q^T[c, h*hs + j] == wq[h, j, c]
    w_q_t = wq.transpose(2, 0, 1).reshape(C, C)
    w_k_t = wk.transpose(2, 0, 1).reshape(C, C)
    w_v_t = wv.transpose(2, 0, 1).reshape(C, C)
    w_qkv_t = jnp.concatenate([w_q_t, w_k_t, w_v_t], axis=1).astype(compute_dtype)  # (C, 3C)
    w_proj_t = wproj.T.astype(compute_dtype)                                        # (C, C)
    b_proj = bproj.reshape(1, C).astype(jnp.float32)
    x_in = x.astype(compute_dtype)

    scale = float(C) ** -0.5  # reference scales by n_embd**-0.5 (C of x), not head_size**-0.5

    # Stage 1: fused all-heads QKV projection, computed ONCE per token (hoisted out of the
    # flash kv loop — previously re-done T/tq times per kv tile).
    q_all, kv_all = _project_qkv(x_in, w_qkv_t, ts=tq, compute_dtype=compute_dtype,
                                 vmem_limit_bytes=vmem_limit_bytes)

    # Stage 2: flash attention + fused output projection.
    grid = (B, T // tq, T // tk)

    def kv_index_map(b, qi, ki):
        # Clamp above-diagonal kv steps to the last causally-needed tile; Pallas skips the
        # DMA when the block index is unchanged, so skipped compute also skips the fetch.
        last_needed = (qi * tq + tq - 1) // tk
        return (b, jnp.minimum(ki, last_needed), 0)

    kernel = functools.partial(
        _mha_flash_kernel,
        num_heads=H, head_size=hs, scale=scale, compute_dtype=compute_dtype)

    return pl.pallas_call(
        kernel,
        out_shape=jax.ShapeDtypeStruct((B, T, C), x.dtype),
        grid=grid,
        in_specs=[
            pl.BlockSpec((1, tq, C), lambda b, qi, ki: (b, qi, 0)),   # Q tile (precomputed)
            pl.BlockSpec((1, tk, 2 * C), kv_index_map),               # [K|V] tile, DMA-clamped
            pl.BlockSpec((C, C), lambda b, qi, ki: (0, 0)),           # W_proj^T (grid-invariant)
            pl.BlockSpec((1, C), lambda b, qi, ki: (0, 0)),           # b_proj
        ],
        out_specs=pl.BlockSpec((1, tq, C), lambda b, qi, ki: (b, qi, 0)),
        scratch_shapes=[
            pltpu.VMEM((tq, H), jnp.float32),     # running max, heads on lanes
            pltpu.VMEM((tq, H), jnp.float32),     # running sum, heads on lanes
            pltpu.VMEM((tq, C), jnp.float32),     # PV accumulator, heads in column slices
        ],
        compiler_params=pltpu.CompilerParams(
            dimension_semantics=("parallel", "parallel", "arbitrary"),
            vmem_limit_bytes=vmem_limit_bytes),
    )(q_all, kv_all, w_proj_t, b_proj)


# ------------------------------------ reference ----------------------------------------

def reference_mha(x, wq, wk, wv, wproj, bproj):
    """Pure-JAX reference mirroring the PyTorch forward (f32)."""
    B, T, C = x.shape
    tril = jnp.tril(jnp.ones((T, T), dtype=x.dtype))
    outs = []
    for h in range(wq.shape[0]):
        q = x @ wq[h].T
        k = x @ wk[h].T
        v = x @ wv[h].T
        wei = q @ jnp.swapaxes(k, -1, -2) * (C ** -0.5)
        wei = jnp.where(tril == 0, -jnp.inf, wei)
        wei = jax.nn.softmax(wei, axis=-1)
        outs.append(wei @ v)
    cat = jnp.concatenate(outs, axis=-1)
    return cat @ wproj.T + bproj


if __name__ == "__main__":
    # Shapes consistent with the module: block_size=64 sequence, n_embd=128.
    B, T = 2, 64
    n_embd = 128
    num_heads = 4
    head_size = n_embd // num_heads

    key = jax.random.PRNGKey(0)
    kx, kq, kk, kv, kw, kb = jax.random.split(key, 6)

    x = jax.random.normal(kx, (B, T, n_embd), dtype=jnp.float32)

    bound = 1.0 / (n_embd ** 0.5)
    wq = jax.random.uniform(kq, (num_heads, head_size, n_embd), jnp.float32, -bound, bound)
    wk = jax.random.uniform(kk, (num_heads, head_size, n_embd), jnp.float32, -bound, bound)
    wv = jax.random.uniform(kv, (num_heads, head_size, n_embd), jnp.float32, -bound, bound)
    wproj = jax.random.uniform(kw, (n_embd, n_embd), jnp.float32, -bound, bound)
    bproj = jax.random.uniform(kb, (1, n_embd), jnp.float32, -bound, bound)

    ref = reference_mha(x, wq, wk, wv, wproj, bproj[0])

    # 1) Exact-precision path (f32 MXU) with small tiles: exercises multi-tile flash
    #    accumulation, the interior (unmasked) / diagonal (masked) split, and the
    #    DMA-clamped causal tile skipping.  Should match the reference tightly.
    out_f32 = multi_head_attention(x, wq, wk, wv, wproj, bproj,
                                   tq=16, tk=16, compute_dtype=jnp.float32)
    out_f32 = jax.block_until_ready(out_f32)
    assert out_f32.shape == (B, T, n_embd)
    assert jnp.allclose(out_f32, ref, atol=1e-4, rtol=1e-4), "f32 path mismatch vs reference"

    # 2) Default fast path: bf16 MXU inputs, f32 accumulation, full-T tiles for this small
    #    shape (flash tiling only pays off once T >> 256).
    out_bf16 = multi_head_attention(x, wq, wk, wv, wproj, bproj)
    out_bf16 = jax.block_until_ready(out_bf16)
    assert out_bf16.shape == (B, T, n_embd)
    assert jnp.allclose(out_bf16, ref, atol=2e-2, rtol=2e-2), "bf16 path mismatch vs reference"

    print("KERNEL_OK")
</pallas_src>

<mosaic_0001>
module attributes {stable_mosaic.version = 11 : i64} {
  func.func @_qkv_proj_kernel(%arg0: i32, %arg1: i32, %arg2: memref<1x16x128xf32, #tpu.memory_space<vmem>>, %arg3: memref<128x384xf32, #tpu.memory_space<vmem>>, %arg4: memref<1x16x128xf32, #tpu.memory_space<vmem>>, %arg5: memref<1x16x256xf32, #tpu.memory_space<vmem>>) attributes {dimension_semantics = [#tpu.dimension_semantics<parallel>, #tpu.dimension_semantics<parallel>], iteration_bounds = array<i64: 2, 4>, scalar_prefetch = 0 : i64, scratch_operands = 0 : i64, tpu.core_type = #tpu.core_type<tc>, window_params = [{transform_indices = @transform_0, window_bounds = array<i64: 1, 16, 128>}, {pipeline_mode = #tpu.pipeline_mode<synchronous>, transform_indices = @transform_1, window_bounds = array<i64: 128, 384>}, {transform_indices = @transform_2, window_bounds = array<i64: 1, 16, 128>}, {transform_indices = @transform_3, window_bounds = array<i64: 1, 16, 256>}]} {
    %c0 = arith.constant 0 : index
    %c0_0 = arith.constant 0 : index
    %c0_1 = arith.constant 0 : index
    %0 = vector.load %arg2[%c0, %c0_0, %c0_1] : memref<1x16x128xf32, #tpu.memory_space<vmem>>, vector<1x16x128xf32>
    %1 = vector.shape_cast %0 : vector<1x16x128xf32> to vector<16x128xf32>
    %c0_2 = arith.constant 0 : index
    %c0_3 = arith.constant 0 : index
    %2 = vector.load %arg3[%c0_2, %c0_3] : memref<128x384xf32, #tpu.memory_space<vmem>>, vector<128x384xf32>
    %cst = arith.constant dense<0.000000e+00> : vector<16x384xf32>
    %3 = tpu.matmul %1, %2, %cst {dimension_numbers = #tpu.dot_dimension_numbers<[1], [0], [0], [1], [0, 0, 1, 1], [], []>} : vector<16x128xf32>, vector<128x384xf32>, vector<16x384xf32> -> vector<16x384xf32>
    %4 = vector.extract_strided_slice %3 {offsets = [0, 0], sizes = [16, 128], strides = [1, 1]} : vector<16x384xf32> to vector<16x128xf32>
    %c0_4 = arith.constant 0 : index
    %c0_5 = arith.constant 0 : index
    %c0_6 = arith.constant 0 : index
    %5 = vector.load %arg4[%c0_4, %c0_5, %c0_6] : memref<1x16x128xf32, #tpu.memory_space<vmem>>, vector<1x16x128xf32>
    %6 = vector.shape_cast %5 : vector<1x16x128xf32> to vector<16x128xf32>
    %7 = vector.shape_cast %4 : vector<16x128xf32> to vector<1x16x128xf32>
    tpu.vector_store %arg4[%c0_4, %c0_5, %c0_6], %7 {strides = array<i32>} : memref<1x16x128xf32, #tpu.memory_space<vmem>>, vector<1x16x128xf32>,
    %8 = vector.extract_strided_slice %3 {offsets = [0, 128], sizes = [16, 256], strides = [1, 1]} : vector<16x384xf32> to vector<16x256xf32>
    %c0_7 = arith.constant 0 : index
    %c0_8 = arith.constant 0 : index
    %c0_9 = arith.constant 0 : index
    %9 = vector.load %arg5[%c0_7, %c0_8, %c0_9] : memref<1x16x256xf32, #tpu.memory_space<vmem>>, vector<1x16x256xf32>
    %10 = vector.shape_cast %9 : vector<1x16x256xf32> to vector<16x256xf32>
    %11 = vector.shape_cast %8 : vector<16x256xf32> to vector<1x16x256xf32>
    tpu.vector_store %arg5[%c0_7, %c0_8, %c0_9], %11 {strides = array<i32>} : memref<1x16x256xf32, #tpu.memory_space<vmem>>, vector<1x16x256xf32>,
    return
  }
  func.func @transform_0(%arg0: i32, %arg1: i32) -> (i32, i32, i32) {
    %c0_i32 = arith.constant 0 : i32
    %c0_i32_0 = arith.constant 0 : i32
    return %arg0, %arg1, %c0_i32 : i32, i32, i32
  }
  func.func @transform_1(%arg0: i32, %arg1: i32) -> (i32, i32) {
    %c0_i32 = arith.constant 0 : i32
    %c0_i32_0 = arith.constant 0 : i32
    %c0_i32_1 = arith.constant 0 : i32
    return %c0_i32, %c0_i32_0 : i32, i32
  }
  func.func @transform_2(%arg0: i32, %arg1: i32) -> (i32, i32, i32) {
    %c0_i32 = arith.constant 0 : i32
    %c0_i32_0 = arith.constant 0 : i32
    return %arg0, %arg1, %c0_i32 : i32, i32, i32
  }
  func.func @transform_3(%arg0: i32, %arg1: i32) -> (i32, i32, i32) {
    %c0_i32 = arith.constant 0 : i32
    %c0_i32_0 = arith.constant 0 : i32
    return %arg0, %arg1, %c0_i32 : i32, i32, i32
  }
}

</mosaic_0001>

<bundles_post_ra>
// kernel: tpu_custom_call.1
= control target key start
LH: loop header
LB: loop body
LE: loop exit
PB: predicated region body
PF: predicated region fallthrough
CT: control target
= control target key end

     0   :  { %s1126_s0 = inlined_call_operand.hbm [shape: f32[2,64,128], index: 0, kind: input, shape index: {}]   ;;  %s1127_s1 = inlined_call_operand.hbm [shape: f32[128,384], index: 1, kind: input, shape index: {}]   ;;  %s1128_s2 = inlined_call_operand.hbm [shape: f32[2,64,128], index: 2, kind: output, shape index: {0}]   ;;  %s1129_s3 = inlined_call_operand.hbm [shape: f32[2,64,256], index: 3, kind: output, shape index: {1}]  }
   0x1   :  { %1135 = sst [smem:[#allocation18_spill]] %s1127_s1 }
   0x2   :  { %1136 = sst [smem:[#allocation19_spill]] %s1129_s3 }
   0x3   :  { %9 = vsyncpa [#allocation3], 0 }
   0x4   :  { %11 = vsyncpa [#allocation3 + $0x1], 0 }
   0x5   :  { %12 = vsyncpa [#allocation6], 0 }
   0x6   :  { %13 = vsyncpa [#allocation4], 0 }
   0x7   :  { %15 = vsyncpa [#allocation4 + $0x1], 0 }
   0x8   :  { %16 = vsyncpa [#allocation9], 0 }
   0x9   :  { %18 = vsyncpa [#allocation9 + $0x1], 0  ;;  %s915_s12 = smov 0   ;;  %s917_s13 = smov 0  }
   0xa   :  { %s919_s14 = smov 0   ;;  %s921_s15 = smov 0  }
   0xb   :  { %s923_s16 = smov 0   ;;  %s925_s17 = smov 0  }
   0xc   :  { %s927_s18 = smov 0   ;;  %s929_s19 = smov 0  }
   0xd LB: > { %1137 = sst [smem:[#allocation14_spill]] %s856_s12  ;;  %s546_s20 = sadd.s32 4294967295, %s884_s19   ;;  %s884_s19 = sphi %s929_s19, %s24_s19   ;;  %s880_s18 = sphi %s927_s18, %s1159_s18   ;;  %s876_s17 = sphi %s925_s17, %s1154_s17   ;;  %s872_s16 = sphi %s923_s16, %s1158_s16   ;;  %s868_s15 = sphi %s921_s15, %s1153_s15   ;;  %s864_s14 = sphi %s919_s14, %s1157_s14   ;;  %s860_s13 = sphi %s917_s13, %s1156_s13   ;;  %s856_s12 = sphi %s915_s12, %s1155_s12  }
   0xe   : > { %1138 = sst [smem:[#allocation15_spill]] %s876_s17  ;;  %s547_s21 = sadd.s32 4294967294, %s884_s19  }
   0xf   : > { %p58_p0 = scmp.ne.s32.totalorder %s860_s13, %s856_s12  ;;  %p959_p1 = scmp.eq.s32.totalorder %s546_s20, 0 }
  0x10   : > { %p963_p2 = scmp.eq.s32.totalorder %s546_s20, 7  ;;  %p111_p3 = scmp.eq.s32.totalorder %s547_s21, 7 }
  0x11   : > { %p969_p4 = por %p959_p1, %p58_p0  ;;  %p548_p5 = scmp.ge.s32.totalorder %s884_s19, 1 }
  0x12   : > { %p974_p6 = por %p111_p3, %p58_p0  ;;  %p146_p7 = scmp.lt.s32.totalorder %s884_s19, 9 }
  0x13   : > { %s1144_s1 = sld [smem:[#allocation18_spill]]  ;;  %s886_s30 = smov [#allocation5]  }
  0x14   : > { %s1142_s25 = scalar_select %p974_p6, 1, 0 }
  0x15   : > { %p982_p8 = pnand %p548_p5, %p146_p7  ;;  %s159_s4 = sshll.u32 %s886_s30, 4  ;;  %s160_s4 = int_to_ptr.vmem [resolvable:$true] %s159_s4 }
  0x16   : > { %1143 = sst [smem:[#allocation16_spill]] %s1142_s25  ;;  %s887_s5 = smov 384  }
  0x17   : > { %p598_p9 = pneg %p982_p8  ;;  %s888_s6 = smov 24  }
  0x18   : > { %s33_s7 = sadd.s32 1, %s876_s17  ;;  %s36_s8 = sadd.s32 1, %s880_s18 }
  0x19   : > { %s157_s28 = sshll.u32 %s1144_s1, 4  ;;  %p599_p10 = pnand %p598_p9, %p959_p1  ;;  %s158_s28 = int_to_ptr.hbm [resolvable:$true] %s157_s28 }
  0x1a   : > { %p34_p11 = scmp.ge.s32.totalorder %s33_s7, 4  ;;  %s45_s9 = sadd.s32 1, %s864_s14 }
  0x1b   : > { %601 = dma.hbm_to_vmem [thread:$0]  (!%p599_p10), %s158_s28, 6144, %s160_s4, [#allocation6], %s887_s5, %s887_s5, %s888_s6  }
  0x1c   : > { %p52_p12 = scmp.ne.s32.totalorder %s864_s14, %s860_s13  ;;  %s1161_s7 = smov (%p34_p11, %s33_s7), 0 }
  0x1d   : > { %1146 = sst [smem:[#allocation17_spill]] %s1161_s7  ;;  %s1163_s8 = smov (!%p34_p11, %s36_s8), %s880_s18 }
  0x1e   : > { %s41_s10 = ssub.s32 %s876_s17, %s1161_s7  ;;  %p53_p13 = scmp.eq.s32.totalorder %s884_s19, 0 }
  0x1f   : > { %p38_p0 = scmp.ge.s32.totalorder %s1163_s8, 2  ;;  %p1003_p3 = por %p963_p2, %p52_p12 }
  0x20   : > { %p1007_p5 = por %p53_p13, %p52_p12  ;;  %p614_p7 = scmp.lt.s32.totalorder %s884_s19, 8 }
  0x21   : > { %s1165_s8 = smov (%p38_p0, %s1163_s8), 0  ;;  %s173_s21 = sand.u32 1, %s864_s14  }
  0x22   : > { %s552_s26 = sshll.u32 %s876_s17, 1  ;;  %s40_s27 = ssub.s32 %s880_s18, %s1165_s8 }
  0x23   : > { %s42_s28 = sor.u32 %s41_s10, %s40_s27  ;;  %s551_s30 = sshll.u32 %s173_s21, 4 }
  0x24   : > { %p43_p9 = scmp.eq.s32.totalorder %s42_s28, 0  ;;  %s553_s23 = sshll.u32 %s880_s18, 3 }
  0x25   : > { %s177_s4 = scalar_lea.vmem [#allocation2], %s551_s30  ;;  %s182_s1 = sadd.s32 %s553_s23, %s552_s26 }
  0x26   : > { %s187_s5 = sshll.u32 %s177_s4, 4  ;;  %s554_s7 = sshll.u32 %s182_s1, 3  ;;  %s188_s5 = int_to_ptr.vmem [resolvable:$true] %s187_s5 }
  0x27   : > { %s1020_s6 = scalar_select %p43_p9, %s864_s14, %s45_s9  }
  0x28   : > { %p603_p2 = pnand %p614_p7, %p1007_p5  ;;  %s184_s3 = scalar_lea.hbm %s1126_s0, %s554_s7 }
  0x29   : > { %s185_s17 = sshll.u32 %s184_s3, 4  ;;  %s174_s10 = scalar_lea.sflag [#allocation3], %s173_s21  ;;  %s186_s17 = int_to_ptr.hbm [resolvable:$true] %s185_s17 }
  0x2a   : > { %s889_s27 = smov 128   ;;  %s890_s28 = smov 8  }
  0x2b   : > { %605 = dma.hbm_to_vmem [thread:$0]  (!%p603_p2), %s186_s17, 256, %s188_s5, %s174_s10, %s889_s27, %s889_s27, %s890_s28  }
  0x2c   : > { %199 = sbr.rel (%p982_p8) target bundleno = 236 (0xec), region = 28  ;;  %s1032_s9 = sand.u32 (!%p982_p8), 1, %s860_s13  }
  0x2d   : > { %s556_s1 = sshll.u32 (!%p982_p8), %s1032_s9, 4  ;;  %s202_s20 = scalar_lea.sflag (!%p982_p8), [#allocation3], %s1032_s9 }
  0x2e   : > { %s1038_s12 = scalar_lea.vmem (!%p982_p8), [#allocation2], %s556_s1 }
  0x31   : > { %839 = dma.done.wait (%p969_p4), %s202_s20, 256  }
  0x32   : > { %841 = vsyncadd (%p969_p4), %s202_s20, 4294967040 }
  0x33   : > { %843 = dma.done.wait (%p959_p1), [#allocation6], 6144  }
  0x34   : > { %845 = vsyncadd (%p959_p1), [#allocation6], 4294961152  ;;  %v291_v0 = vld [vmem:[#allocation5 + $0x178] sm:$0xff]  ;;  %v288_v1 = vld [vmem:[#allocation5 + $0x160] sm:$0xff]  ;;  %s562_s3 = sshll.u32 %s868_s15, 1  ;;  %s563_s17 = sshll.u32 %s872_s16, 3 }
  0x35   : > { %338 = vmatpush.msra.mxu2 %v291_v0  ;;  %v290_v2 = vld [vmem:[#allocation5 + $0x170] sm:$0xff]  ;;  %v289_v3 = vld [vmem:[#allocation5 + $0x168] sm:$0xff]  ;;  %v287_v5 = vld [vmem:[#allocation5 + $0x158] sm:$0xff]  ;;  %s384_s22 = sadd.s32 %s563_s17, %s562_s3  ;;  %s559_s24 = sshll.u32 %s1032_s9, 5 }
  0x36   : > { %v285_v4 = vld [vmem:[#allocation5 + $0x148] sm:$0xff]  ;;  %315 = vmatpush.msra.mxu1 %v290_v2  ;;  %572 = vmatpush.msra.mxu3 %v289_v3  ;;  %v286_v6 = vld [vmem:[#allocation5 + $0x150] sm:$0xff]  ;;  %v284_v7 = vld [vmem:[#allocation5 + $0x140] sm:$0xff]  ;;  %s571_s25 = sshll.u32 %s868_s15, 2  ;;  %s564_s29 = sshll.u32 %s384_s22, 3 }
  0x37   : > { %339 = vmatpush.msra.mxu2 %v288_v1  ;;  %v283_v8 = vld [vmem:[#allocation5 + $0x138] sm:$0xff]  ;;  %292 = vmatpush.msra.mxu0 %v289_v3  ;;  %v282_v9 = vld [vmem:[#allocation5 + $0x130] sm:$0xff]  ;;  %v281_v10 = vld [vmem:[#allocation5 + $0x128] sm:$0xff]  ;;  %s567_s7 = sshll.u32 %s872_s16, 4  ;;  %s386_s30 = scalar_lea.hbm %s1128_s2, %s564_s29 }
  0x38   : > { %316 = vmatpush.msra.mxu1 %v287_v5  ;;  %573 = vmatpush.msra.mxu3 %v286_v6  ;;  %v280_v11 = vld [vmem:[#allocation5 + $0x120] sm:$0xff]  ;;  %v279_v12 = vld [vmem:[#allocation5 + $0x118] sm:$0xff]  ;;  %v278_v13 = vld [vmem:[#allocation5 + $0x110] sm:$0xff]  ;;  %s404_s23 = sadd.s32 %s571_s25, %s567_s7  ;;  %s1058_s4 = scalar_lea.vmem [#allocation8], %s559_s24 }
  0x39   : > { %340 = vmatpush.msra.mxu2 %v285_v4  ;;  %293 = vmatpush.msra.mxu0 %v286_v6  ;;  %v277_v14 = vld [vmem:[#allocation5 + $0x108] sm:$0xff]  ;;  %v276_v15 = vld [vmem:[#allocation5 + $0x100] sm:$0xff]  ;;  %v275_v16 = vld [vmem:[#allocation5 + $0xf8] sm:$0xff]  ;;  %s231_s5 = scalar_lea.vmem [#allocation7], %s556_s1  ;;  %s389_s15 = sshll.u32 %s386_s30, 4  ;;  %s390_s15 = int_to_ptr.hbm [resolvable:$true] %s389_s15 }
  0x3a   : > { %317 = vmatpush.msra.mxu1 %v284_v7  ;;  %574 = vmatpush.msra.mxu3 %v283_v8  ;;  %v274_v17 = vld [vmem:[#allocation5 + $0xf0] sm:$0xff]  ;;  %v273_v18 = vld [vmem:[#allocation5 + $0xe8] sm:$0xff]  ;;  %v272_v19 = vld [vmem:[#allocation5 + $0xe0] sm:$0xff]  ;;  %s387_s10 = sshll.u32 %s231_s5, 4  ;;  %s568_s16 = sshll.u32 %s404_s23, 3  ;;  %s1064_s10 = int_to_ptr.vmem [resolvable:$true] %s387_s10 }
  0x3b   : > { %341 = vmatpush.msra.mxu2 %v282_v9  ;;  %294 = vmatpush.msra.mxu0 %v283_v8  ;;  %v271_v20 = vld [vmem:[#allocation5 + $0xd8] sm:$0xff]  ;;  %v270_v21 = vld [vmem:[#allocation5 + $0xd0] sm:$0xff]  ;;  %v269_v22 = vld [vmem:[#allocation5 + $0xc8] sm:$0xff]  ;;  %s407_s27 = sshll.u32 %s1058_s4, 4  ;;  %s368_s22 = scalar_lea.sflag [#allocation4], %s1032_s9  ;;  %s1070_s27 = int_to_ptr.vmem [resolvable:$true] %s407_s27 }
  0x3c   : > { %318 = vmatpush.msra.mxu1 %v281_v10  ;;  %575 = vmatpush.msra.mxu3 %v280_v11  ;;  %v268_v23 = vld [vmem:[#allocation5 + $0xc0] sm:$0xff]  ;;  %v267_v24 = vld [vmem:[#allocation5 + $0xb8] sm:$0xff]  ;;  %v266_v25 = vld [vmem:[#allocation5 + $0xb0] sm:$0xff]  ;;  %s764_s24 = sshra.s32 %s390_s15, 4  ;;  %s770_s21 = scalar_lea.hbm %s1128_s2, 128  ;;  %s765_s24 = int_to_ptr.hbm [resolvable:$true] %s764_s24 }
  0x3d   : > { %342 = vmatpush.msra.mxu2 %v279_v12  ;;  %295 = vmatpush.msra.mxu0 %v280_v11  ;;  %v265_v26 = vld [vmem:[#allocation5 + $0xa8] sm:$0xff]  ;;  %v264_v27 = vld [vmem:[#allocation5 + $0xa0] sm:$0xff]  ;;  %v263_v28 = vld [vmem:[#allocation5 + $0x98] sm:$0xff]  ;;  %s766_s25 = scalar_lea.hbm %s765_s24, 16  ;;  %p771_p10 = scmp.lt.s32.totalorder %s765_s24, %s1128_s2 }
  0x3e   : > { %319 = vmatpush.msra.mxu1 %v278_v13  ;;  %576 = vmatpush.msra.mxu3 %v277_v14  ;;  %v262_v29 = vld [vmem:[#allocation5 + $0x90] sm:$0xff]  ;;  %v261_v30 = vld [vmem:[#allocation5 + $0x88] sm:$0xff]  ;;  %v260_v31 = vld [vmem:[#allocation5 + $0x80] sm:$0xff]  ;;  %p767_p1 = scmp.ne.s32.totalorder %s765_s24, %s766_s25  ;;  %p772_p11 = scmp.lt.s32.totalorder %s770_s21, %s766_s25 }
  0x3f   : > { %343 = vmatpush.msra.mxu2 %v276_v15  ;;  %296 = vmatpush.msra.mxu0 %v277_v14  ;;  %v259_v32 = vld [vmem:[#allocation5 + $0x78] sm:$0xff]  ;;  %v258_v33 = vld [vmem:[#allocation5 + $0x70] sm:$0xff]  ;;  %v257_v34 = vld [vmem:[#allocation5 + $0x68] sm:$0xff] }
  0x40   : > { %320 = vmatpush.msra.mxu1 %v275_v16  ;;  %577 = vmatpush.msra.mxu3 %v274_v17  ;;  %v256_v35 = vld [vmem:[#allocation5 + $0x60] sm:$0xff]  ;;  %v255_v36 = vld [vmem:[#allocation5 + $0x58] sm:$0xff]  ;;  %v254_v37 = vld [vmem:[#allocation5 + $0x50] sm:$0xff]  ;;  %p768_p4 = pnand %p767_p1, %p1003_p3  ;;  %p773_p12 = por %p772_p11, %p771_p10 }
  0x41   : > { %344 = vmatpush.msra.mxu2 %v273_v18  ;;  %297 = vmatpush.msra.mxu0 %v274_v17  ;;  %v253_v38 = vld [vmem:[#allocation5 + $0x48] sm:$0xff]  ;;  %v252_v39 = vld [vmem:[#allocation5 + $0x40] sm:$0xff]  ;;  %v251_v40 = vld [vmem:[#allocation5 + $0x38] sm:$0xff] }
  0x42   : > { %321 = vmatpush.msra.mxu1 %v272_v19  ;;  %578 = vmatpush.msra.mxu3 %v271_v20  ;;  %v250_v41 = vld [vmem:[#allocation5 + $0x30] sm:$0xff]  ;;  %v249_v42 = vld [vmem:[#allocation5 + $0x28] sm:$0xff]  ;;  %v248_v43 = vld [vmem:[#allocation5 + $0x20] sm:$0xff]  ;;  %p769_p8 = pneg %p768_p4 }
  0x43   : > { %345 = vmatpush.msra.mxu2 %v270_v21  ;;  %298 = vmatpush.msra.mxu0 %v271_v20  ;;  %v247_v44 = vld [vmem:[#allocation5 + $0x18] sm:$0xff]  ;;  %v246_v45 = vld [vmem:[#allocation5 + $0x10] sm:$0xff]  ;;  %v245_v47 = vld [vmem:[#allocation5 + $0x8] sm:$0xff] }
  0x44   : > { %322 = vmatpush.msra.mxu1 %v269_v22  ;;  %579 = vmatpush.msra.mxu3 %v268_v23  ;;  %v242_v46 = vld [vmem:[%s1038_s12] sm:$0xff]  ;;  %v243_v49 = vld [vmem:[%s1038_s12 + $0x8] sm:$0xff]  ;;  %s1149_s12 = sld [smem:[#allocation19_spill]]  ;;  %p774_p13 = pnand %p773_p12, %p769_p8 }
  0x45   : > { %346 = vmatpush.msra.mxu2 %v267_v24  ;;  %299 = vmatpush.msra.mxu0 %v268_v23  ;;  %v244_v48 = vld [vmem:[#allocation5] sm:$0xff] }
  0x46   : > { %323 = vmatpush.msra.mxu1 %v266_v25  ;;  %580 = vmatpush.msra.mxu3 %v265_v26 }
  0x47   : > { %347 = vmatpush.msra.mxu2 %v264_v27  ;;  %300 = vmatpush.msra.mxu0 %v265_v26 }
  0x48   : > { %324 = vmatpush.msra.mxu1 %v263_v28  ;;  %581 = vmatpush.msra.mxu3 %v262_v29 }
  0x49   : > { %348 = vmatpush.msra.mxu2 %v261_v30  ;;  %301 = vmatpush.msra.mxu0 %v262_v29 }
  0x4a   : > { %325 = vmatpush.msra.mxu1 %v260_v31  ;;  %582 = vmatpush.msra.mxu3 %v259_v32  ;;  %s1150_s3 = smov %s1149_s12  ;;  %s406_s17 = scalar_lea.hbm %s1149_s12, %s568_s16 }
  0x4b   : > { %349 = vmatpush.msra.mxu2 %v258_v33  ;;  %302 = vmatpush.msra.mxu0 %v259_v32  ;;  %s409_s1 = sshll.u32 %s406_s17, 4  ;;  %s410_s1 = int_to_ptr.hbm [resolvable:$true] %s409_s1 }
  0x4c   : > { %326 = vmatpush.msra.mxu1 %v257_v34  ;;  %583 = vmatpush.msra.mxu3 %v256_v35 }
  0x4d   : > { %350 = vmatpush.msra.mxu2 %v255_v36  ;;  %303 = vmatpush.msra.mxu0 %v256_v35 }
  0x4e   : > { %327 = vmatpush.msra.mxu1 %v254_v37  ;;  %584 = vmatpush.msra.mxu3 %v253_v38 }
  0x4f   : > { %351 = vmatpush.msra.mxu2 %v252_v39  ;;  %304 = vmatpush.msra.mxu0 %v253_v38 }
  0x50   : > { %328 = vmatpush.msra.mxu1 %v251_v40  ;;  %585 = vmatpush.msra.mxu3 %v250_v41 }
  0x51   : > { %352 = vmatpush.msra.mxu2 %v249_v42  ;;  %305 = vmatpush.msra.mxu0 %v250_v41 }
  0x52   : > { %329 = vmatpush.msra.mxu1 %v248_v43  ;;  %586 = vmatpush.msra.mxu3 %v247_v44 }
  0x53   : > { %353 = vmatpush.msra.mxu2 %v246_v45  ;;  %306 = vmatpush.msra.mxu0 %v247_v44 }
  0x54   : > { %354 = vmatmul.f32.vlgmr.msra.gmra.mxu2 %v242_v46  ;;  %330 = vmatpush.msra.mxu1 %v245_v47 }
  0x55   : > { %331 = vmatmul.f32.vlgmr.msra.gmra.mxu1 %v242_v46  ;;  %587 = vmatpush.msra.mxu3 %v244_v48 }
  0x56   : > { %311 = vmatmul.f32.vlgmr.msra.gmra.mxu3 %v243_v49  ;;  %307 = vmatpush.msra.mxu0 %v244_v48 }
  0x57   : > { %308 = vmatmul.f32.vlgmr.msra.gmra.mxu0 %v242_v46 }
  0x5c   : > { %357 = vmatmul.f32.gmra.mxu2 %v243_v49 }
  0x5d   : > { %334 = vmatmul.f32.gmra.mxu1 %v243_v49 }
  0xd2   : > { %v332_v50 = vpop.f32.mrf.mxu1 }
  0xd3   : > { %363 = vst [vmem:[%s1058_s4] sm:$0xff] %v332_v50 }
  0xd4   : > { %v309_v51 = vpop.f32.mrf.mxu0 }
  0xd5   : > { %361 = vst [vmem:[%s231_s5] sm:$0xff] %v309_v51 }
  0xd7   : > { %v355_v52 = vpop.f32.mrf.mxu2 }
  0xd8   : > { %364 = vst [vmem:[%s1058_s4 + $0x8] sm:$0xff] %v355_v52 }
  0xd9   : > { %v312_v53 = vpop.f32.mrf.mxu3 }
  0xda   : > { %362 = vst [vmem:[%s231_s5 + $0x8] sm:$0xff] %v312_v53  ;;  %v335_v54 = vpop.f32.mrf.mxu1 }
  0xdb   : > { %365 = vst [vmem:[%s1058_s4 + $0x10] sm:$0xff] %v335_v54 }
  0xdc   : > { %777 = shalt.err (!%p774_p13)
}
  0xdd   : > { %s891_s23 = smov 128   ;;  %s892_s5 = smov 8  }
  0xde   : > { %594 = dma.vmem_to_hbm [thread:$0]  (%p1003_p3), %s1064_s10, 256, %s390_s15, %s368_s22, %s891_s23, %s891_s23, %s892_s5  }
  0xdf   : > { %v358_v55 = vpop.f32.mrf.mxu2  ;;  %s373_s16 = scalar_lea.sflag [#allocation9], %s1032_s9  ;;  %s792_s28 = sshra.s32 %s410_s1, 4  ;;  %s793_s28 = int_to_ptr.hbm [resolvable:$true] %s792_s28 }
  0xe0   : > { %366 = vst [vmem:[%s1058_s4 + $0x18] sm:$0xff] %v358_v55  ;;  %s794_s20 = scalar_lea.hbm %s793_s28, 32  ;;  %s798_s24 = scalar_lea.hbm %s1150_s3, 256 }
  0xe1   : > { %p795_p0 = scmp.ne.s32.totalorder %s793_s28, %s794_s20  ;;  %p799_p9 = scmp.lt.s32.totalorder %s793_s28, %s1150_s3 }
  0xe2   : > { %p800_p2 = scmp.lt.s32.totalorder %s798_s24, %s794_s20 }
  0xe3   : > { %p796_p5 = pnand %p795_p0, %p1003_p3 }
  0xe4   : > { %p801_p1 = por %p800_p2, %p799_p9 }
  0xe5   : > { %p797_p7 = pneg %p796_p5 }
  0xe7   : > { %p802_p4 = pnand %p801_p1, %p797_p7 }
  0xe9   : > { %805 = shalt.err (!%p802_p4)
}
  0xea   : > { %s893_s9 = smov 256   ;;  %s894_s4 = smov 16  }
  0xeb   : > { %595 = dma.vmem_to_hbm [thread:$0]  (%p1003_p3), %s1070_s27, 512, %s410_s1, %s373_s16, %s893_s9, %s893_s9, %s894_s4  }
  0xec PF: > { %s1151_s10 = sld [smem:[#allocation14_spill]]  ;;  %p616_p8 = scmp.ge.s32.totalorder %s884_s19, 2 }
  0xee   : > { %p607_p10 = pnand %p616_p8, %p974_p6 }
  0xf0   : > { %p608_p11 = pneg %p607_p10 }
  0xf2   : > { %s424_s22 = sand.u32 1, %s1151_s10  }
  0xf3   : > { %s425_s7 = scalar_lea.sflag [#allocation4], %s424_s22 }
  0xf4   : > { %847 = dma.done.wait (%p608_p11), %s425_s7, 256  }
  0xf5   : > { %849 = vsyncadd (%p608_p11), %s425_s7, 4294967040  ;;  %s435_s21 = scalar_lea.sflag [#allocation9], %s424_s22 }
  0xf6   : > { %851 = dma.done.wait (%p608_p11), %s435_s21, 512  }
  0xf7   : > { %853 = vsyncadd (%p608_p11), %s435_s21, 4294966784  ;;  %s24_s19 = sadd.s32 1, %s884_s19   ;;  %s1153_s15 = sld [smem:[#allocation15_spill]] }
  0xf8   : > { %p21_p12 = scmp.ge.s32.totalorder %s24_s19, 10   ;;  %s1154_s17 = sld [smem:[#allocation17_spill]] }
  0xf9   : > { %s1155_s12 = smov %s860_s13  ;;  %s1156_s13 = smov %s864_s14 }
  0xfa   : > { %s1157_s14 = smov %s1020_s6  ;;  %s1158_s16 = smov %s880_s18 }
  0xfb   : > { %s1159_s18 = smov %s1165_s8  ;;  %23 = sbr.rel (!%p21_p12) target bundleno = 13 (0xd), region = 94 }
 0x100   :  { %441 = vsyncpa [#allocation3], 1 }
 0x101   :  { %443 = vsyncpa [#allocation3 + $0x1], 1 }
 0x102   :  { %444 = vsyncpa [#allocation6], 1 }
 0x103   :  { %445 = vsyncpa [#allocation4], 1 }
 0x104   :  { %447 = vsyncpa [#allocation4 + $0x1], 1 }
 0x105   :  { %448 = vsyncpa [#allocation9], 1 }
 0x106   :  { %450 = vsyncpa [#allocation9 + $0x1], 1 }

</bundles_post_ra>
